<compile_context>
chip_gen: v5e
topology: v5e:2x2
jax: 0.10.0
libtpu: 0.0.40
codegen_flags: <defaults>
</compile_context>

<pallas_src>
import jax
import jax.numpy as jnp
from jax.experimental import pallas as pl
from jax.experimental.pallas import tpu as pltpu

IN_PAD = 32      # input features padded 30 -> 32 (sublane-aligned K for layer 1)
HID_PAD = 128    # hidden dim padded 24 -> 128 (one lane width)
OUT_PAD = 8      # output padded 3 -> 8 (narrow store; wrapper slices back to 3)
SUBLANE = 16     # batch-tile granularity (bf16 native sublane tile; also /8 for f32)
MAX_TILE_B = 2048  # default rows per grid step (sweepable 2048-8192)


def _round_up(n, m):
    return ((n + m - 1) // m) * m


def mlp_kernel(x_ref, w1_ref, b1_ref, w2_ref, b2_ref, w3_ref, b3_ref, o_ref):
    """One batch tile of the 3-layer MLP; parameters stay VMEM-resident.

    x_ref : (TILE_B, 32)  bf16  zero-padded input (first 30 lanes real)
    w1_ref: (32, 128)     bf16
    b1_ref: (1, 128)      f32
    w2_ref: (128, 128)    bf16
    b2_ref: (1, 128)      f32
    w3_ref: (128, 8)      bf16
    b3_ref: (1, 8)        f32
    o_ref : (TILE_B, 8)   f32   (first 3 lanes real)
    """
    x = x_ref[...]

    # Layer 1: Linear (bf16 operands, f32 accumulate) + bias + ReLU, recast to bf16.
    h1 = jnp.dot(x, w1_ref[...], preferred_element_type=jnp.float32) + b1_ref[...]
    h1 = jnp.maximum(h1, 0.0).astype(jnp.bfloat16)

    # Layer 2
    h2 = jnp.dot(h1, w2_ref[...], preferred_element_type=jnp.float32) + b2_ref[...]
    h2 = jnp.maximum(h2, 0.0).astype(jnp.bfloat16)

    # Layer 3 (no activation); W3 is already narrow so the result is (TILE_B, 8).
    out = jnp.dot(h2, w3_ref[...], preferred_element_type=jnp.float32) + b3_ref[...]
    o_ref[...] = out.astype(o_ref.dtype)


def pack_params(params, *, weight_dtype=jnp.bfloat16):
    """Zero-pad the six (W, b) arrays into MXU-friendly slabs.

    Weights -> bf16 (halves parameter traffic, native MXU path); biases stay f32
    (negligible bytes, added to the f32 accumulators).
    """
    w1, b1, w2, b2, w3, b3 = params

    def pad_w(w, rows, cols):
        out = jnp.zeros((rows, cols), weight_dtype)
        return out.at[: w.shape[0], : w.shape[1]].set(w.astype(weight_dtype))

    def pad_b(b, cols):
        out = jnp.zeros((1, cols), jnp.float32)
        return out.at[:, : b.shape[-1]].set(b.reshape(1, -1).astype(jnp.float32))

    return (pad_w(w1, IN_PAD, HID_PAD), pad_b(b1, HID_PAD),
            pad_w(w2, HID_PAD, HID_PAD), pad_b(b2, HID_PAD),
            pad_w(w3, HID_PAD, OUT_PAD), pad_b(b3, OUT_PAD))


def _choose_tile(batch, max_tile_b):
    """Pick the batch tile: big (amortize ~0.35us/step), sublane-aligned, and split
    at least 2-ways when the batch allows it so both v7x TensorCores get work."""
    b_ceil = _round_up(max(batch, 1), SUBLANE)
    tile_b = min(_round_up(max_tile_b, SUBLANE), b_ceil)
    two_way = _round_up(-(-b_ceil // 2), SUBLANE)
    if b_ceil >= 2 * SUBLANE and tile_b > two_way:
        tile_b = two_way
    b_pad = _round_up(b_ceil, tile_b)
    return tile_b, b_pad


def mouse_movement_nn_forward(x, packed_params, *, output_size=3,
                              max_tile_b=MAX_TILE_B, interpret=False):
    """Batch-gridded Pallas forward pass. Returns (B, output_size) float32."""
    w1p, b1p, w2p, b2p, w3p, b3p = packed_params
    B, in_features = x.shape

    tile_b, b_pad = _choose_tile(B, max_tile_b)
    grid = (b_pad // tile_b,)

    # Narrow, bf16 input slab; single fused pad (no 128-wide scatter copy).
    x_in = x.astype(jnp.bfloat16)
    if b_pad != B or IN_PAD != in_features:
        x_in = jnp.pad(x_in, ((0, b_pad - B), (0, IN_PAD - in_features)))

    params = (w1p, b1p, w2p, b2p, w3p, b3p)
    flops = 2 * b_pad * (w1p.shape[0] * w1p.shape[1]
                         + w2p.shape[0] * w2p.shape[1]
                         + w3p.shape[0] * w3p.shape[1])
    bytes_accessed = (int(x_in.size) * x_in.dtype.itemsize
                      + sum(int(p.size) * p.dtype.itemsize for p in params)
                      + b_pad * OUT_PAD * 4)

    out_padded = pl.pallas_call(
        mlp_kernel,
        out_shape=jax.ShapeDtypeStruct((b_pad, OUT_PAD), jnp.float32),
        grid=grid,
        in_specs=[
            # x: streamed one batch tile per grid step (auto double-buffered).
            pl.BlockSpec((tile_b, IN_PAD), lambda i: (i, 0)),
            # parameters: constant index maps -> fetched once, VMEM-resident.
            pl.BlockSpec(w1p.shape, lambda i: (0, 0)),
            pl.BlockSpec(b1p.shape, lambda i: (0, 0)),
            pl.BlockSpec(w2p.shape, lambda i: (0, 0)),
            pl.BlockSpec(b2p.shape, lambda i: (0, 0)),
            pl.BlockSpec(w3p.shape, lambda i: (0, 0)),
            pl.BlockSpec(b3p.shape, lambda i: (0, 0)),
        ],
        out_specs=pl.BlockSpec((tile_b, OUT_PAD), lambda i: (i, 0)),
        compiler_params=pltpu.CompilerParams(
            dimension_semantics=("parallel",),  # shard batch tiles across TCs (v7x)
        ),
        cost_estimate=pl.CostEstimate(flops=flops, transcendentals=0,
                                      bytes_accessed=bytes_accessed),
        interpret=interpret,
    )(x_in, *params)

    # Drop batch padding and the padded output lanes.
    return out_padded[:B, :output_size]


def init_params(input_size=30, hidden_size=24, output_size=3, seed=42):
    """Deterministic parameter init (PyTorch-style uniform bounds, synthetic weights)."""
    key = jax.random.PRNGKey(seed)
    ks = jax.random.split(key, 6)

    def linear_init(kw, kb, fan_in, fan_out):
        bound = 1.0 / jnp.sqrt(jnp.float32(fan_in))
        # Stored as (in, out) so the kernel does x @ W directly
        # (PyTorch stores (out, in) and does x @ W.T -- semantics identical).
        w = jax.random.uniform(kw, (fan_in, fan_out), jnp.float32, -bound, bound)
        b = jax.random.uniform(kb, (1, fan_out), jnp.float32, -bound, bound)
        return w, b

    w1, b1 = linear_init(ks[0], ks[1], input_size, hidden_size)
    w2, b2 = linear_init(ks[2], ks[3], hidden_size, hidden_size)
    w3, b3 = linear_init(ks[4], ks[5], hidden_size, output_size)
    return (w1, b1, w2, b2, w3, b3)


def reference_forward(x, params, *, compute_dtype=jnp.float32):
    """Pure-JAX reference. compute_dtype=bf16 mirrors the kernel's MXU operand dtype."""
    w1, b1, w2, b2, w3, b3 = params

    def lin(h, w, b):
        return jnp.dot(h.astype(compute_dtype), w.astype(compute_dtype),
                       preferred_element_type=jnp.float32) + b

    h1 = jnp.maximum(lin(x, w1, b1), 0.0)
    h2 = jnp.maximum(lin(h1, w2, b2), 0.0)
    return lin(h2, w3, b3)


if __name__ == "__main__":
    input_size, hidden_size, output_size = 30, 24, 3

    params = init_params(input_size, hidden_size, output_size)
    packed = pack_params(params)

    # Small-batch check (single grid step).
    batch = 8
    x = jax.random.normal(jax.random.PRNGKey(0), (batch, input_size), jnp.float32)
    out = jax.block_until_ready(mouse_movement_nn_forward(x, packed))
    ref_bf16 = reference_forward(x, params, compute_dtype=jnp.bfloat16)
    ref_f32 = reference_forward(x, params)
    assert out.shape == (batch, output_size), out.shape
    assert jnp.allclose(out, ref_bf16, atol=2e-3, rtol=2e-3), "mismatch vs bf16 reference (B=8)"
    assert jnp.allclose(out, ref_f32, atol=3e-2, rtol=3e-2), "mismatch vs f32 reference (B=8)"

    # Multi-tile check: default tiling splits 520 rows into a 2-step parallel grid
    # (exercises batch padding + the v7x two-TensorCore split path).
    batch2 = 520
    x2 = jax.random.normal(jax.random.PRNGKey(1), (batch2, input_size), jnp.float32)
    out2 = jax.block_until_ready(mouse_movement_nn_forward(x2, packed))
    ref2_bf16 = reference_forward(x2, params, compute_dtype=jnp.bfloat16)
    ref2_f32 = reference_forward(x2, params)
    assert out2.shape == (batch2, output_size), out2.shape
    assert jnp.allclose(out2, ref2_bf16, atol=2e-3, rtol=2e-3), "mismatch vs bf16 reference (B=520)"
    assert jnp.allclose(out2, ref2_f32, atol=3e-2, rtol=3e-2), "mismatch vs f32 reference (B=520)"

    print("KERNEL_OK")
</pallas_src>

<mosaic_0001>
module attributes {stable_mosaic.version = 11 : i64} {
  func.func @mlp_kernel(%arg0: i32, %arg1: memref<16x32xbf16, #tpu.memory_space<vmem>>, %arg2: memref<32x128xbf16, #tpu.memory_space<vmem>>, %arg3: memref<1x128xf32, #tpu.memory_space<vmem>>, %arg4: memref<128x128xbf16, #tpu.memory_space<vmem>>, %arg5: memref<1x128xf32, #tpu.memory_space<vmem>>, %arg6: memref<128x8xbf16, #tpu.memory_space<vmem>>, %arg7: memref<1x8xf32, #tpu.memory_space<vmem>>, %arg8: memref<16x8xf32, #tpu.memory_space<vmem>>) attributes {dimension_semantics = [#tpu.dimension_semantics<parallel>], iteration_bounds = array<i64: 1>, scalar_prefetch = 0 : i64, scratch_operands = 0 : i64, tpu.core_type = #tpu.core_type<tc>, window_params = [{transform_indices = @transform_0, window_bounds = array<i64: 16, 32>}, {pipeline_mode = #tpu.pipeline_mode<synchronous>, transform_indices = @transform_1, window_bounds = array<i64: 32, 128>}, {pipeline_mode = #tpu.pipeline_mode<synchronous>, transform_indices = @transform_2, window_bounds = array<i64: 1, 128>}, {pipeline_mode = #tpu.pipeline_mode<synchronous>, transform_indices = @transform_3, window_bounds = array<i64: 128, 128>}, {pipeline_mode = #tpu.pipeline_mode<synchronous>, transform_indices = @transform_4, window_bounds = array<i64: 1, 128>}, {pipeline_mode = #tpu.pipeline_mode<synchronous>, transform_indices = @transform_5, window_bounds = array<i64: 128, 8>}, {pipeline_mode = #tpu.pipeline_mode<synchronous>, transform_indices = @transform_6, window_bounds = array<i64: 1, 8>}, {transform_indices = @transform_7, window_bounds = array<i64: 16, 8>}]} {
    %c0 = arith.constant 0 : index
    %c0_0 = arith.constant 0 : index
    %0 = vector.load %arg1[%c0, %c0_0] : memref<16x32xbf16, #tpu.memory_space<vmem>>, vector<16x32xbf16>
    %c0_1 = arith.constant 0 : index
    %c0_2 = arith.constant 0 : index
    %1 = vector.load %arg2[%c0_1, %c0_2] : memref<32x128xbf16, #tpu.memory_space<vmem>>, vector<32x128xbf16>
    %cst = arith.constant dense<0.000000e+00> : vector<16x128xf32>
    %2 = tpu.matmul %0, %1, %cst {dimension_numbers = #tpu.dot_dimension_numbers<[1], [0], [0], [1], [0, 0, 1, 1], [], []>} : vector<16x32xbf16>, vector<32x128xbf16>, vector<16x128xf32> -> vector<16x128xf32>
    %c0_3 = arith.constant 0 : index
    %c0_4 = arith.constant 0 : index
    %3 = vector.load %arg3[%c0_3, %c0_4] : memref<1x128xf32, #tpu.memory_space<vmem>>, vector<1x128xf32>
    %4 = vector.broadcast %3 : vector<1x128xf32> to vector<16x128xf32>
    %5 = arith.addf %2, %4 : vector<16x128xf32>
    %cst_5 = arith.constant 0.000000e+00 : f32
    %6 = vector.broadcast %cst_5 : f32 to vector<16x128xf32>
    %7 = arith.maximumf %5, %6 : vector<16x128xf32>
    %8 = arith.truncf %7 : vector<16x128xf32> to vector<16x128xbf16>
    %c0_6 = arith.constant 0 : index
    %c0_7 = arith.constant 0 : index
    %9 = vector.load %arg4[%c0_6, %c0_7] : memref<128x128xbf16, #tpu.memory_space<vmem>>, vector<128x128xbf16>
    %cst_8 = arith.constant dense<0.000000e+00> : vector<16x128xf32>
    %10 = tpu.matmul %8, %9, %cst_8 {dimension_numbers = #tpu.dot_dimension_numbers<[1], [0], [0], [1], [0, 0, 1, 1], [], []>} : vector<16x128xbf16>, vector<128x128xbf16>, vector<16x128xf32> -> vector<16x128xf32>
    %c0_9 = arith.constant 0 : index
    %c0_10 = arith.constant 0 : index
    %11 = vector.load %arg5[%c0_9, %c0_10] : memref<1x128xf32, #tpu.memory_space<vmem>>, vector<1x128xf32>
    %12 = vector.broadcast %11 : vector<1x128xf32> to vector<16x128xf32>
    %13 = arith.addf %10, %12 : vector<16x128xf32>
    %cst_11 = arith.constant 0.000000e+00 : f32
    %14 = vector.broadcast %cst_11 : f32 to vector<16x128xf32>
    %15 = arith.maximumf %13, %14 : vector<16x128xf32>
    %16 = arith.truncf %15 : vector<16x128xf32> to vector<16x128xbf16>
    %c0_12 = arith.constant 0 : index
    %c0_13 = arith.constant 0 : index
    %17 = vector.load %arg6[%c0_12, %c0_13] : memref<128x8xbf16, #tpu.memory_space<vmem>>, vector<128x8xbf16>
    %cst_14 = arith.constant dense<0.000000e+00> : vector<16x8xf32>
    %18 = tpu.matmul %16, %17, %cst_14 {dimension_numbers = #tpu.dot_dimension_numbers<[1], [0], [0], [1], [0, 0, 1, 1], [], []>} : vector<16x128xbf16>, vector<128x8xbf16>, vector<16x8xf32> -> vector<16x8xf32>
    %c0_15 = arith.constant 0 : index
    %c0_16 = arith.constant 0 : index
    %19 = vector.load %arg7[%c0_15, %c0_16] : memref<1x8xf32, #tpu.memory_space<vmem>>, vector<1x8xf32>
    %20 = vector.broadcast %19 : vector<1x8xf32> to vector<16x8xf32>
    %21 = arith.addf %18, %20 : vector<16x8xf32>
    %c0_17 = arith.constant 0 : index
    %c0_18 = arith.constant 0 : index
    %22 = vector.load %arg8[%c0_17, %c0_18] : memref<16x8xf32, #tpu.memory_space<vmem>>, vector<16x8xf32>
    tpu.vector_store %arg8[%c0_17, %c0_18], %21 {strides = array<i32>} : memref<16x8xf32, #tpu.memory_space<vmem>>, vector<16x8xf32>,
    return
  }
  func.func @transform_0(%arg0: i32) -> (i32, i32) {
    %c0_i32 = arith.constant 0 : i32
    %c0_i32_0 = arith.constant 0 : i32
    return %arg0, %c0_i32 : i32, i32
  }
  func.func @transform_1(%arg0: i32) -> (i32, i32) {
    %c0_i32 = arith.constant 0 : i32
    %c0_i32_0 = arith.constant 0 : i32
    %c0_i32_1 = arith.constant 0 : i32
    return %c0_i32, %c0_i32_0 : i32, i32
  }
  func.func @transform_2(%arg0: i32) -> (i32, i32) {
    %c0_i32 = arith.constant 0 : i32
    %c0_i32_0 = arith.constant 0 : i32
    %c0_i32_1 = arith.constant 0 : i32
    return %c0_i32, %c0_i32_0 : i32, i32
  }
  func.func @transform_3(%arg0: i32) -> (i32, i32) {
    %c0_i32 = arith.constant 0 : i32
    %c0_i32_0 = arith.constant 0 : i32
    %c0_i32_1 = arith.constant 0 : i32
    return %c0_i32, %c0_i32_0 : i32, i32
  }
  func.func @transform_4(%arg0: i32) -> (i32, i32) {
    %c0_i32 = arith.constant 0 : i32
    %c0_i32_0 = arith.constant 0 : i32
    %c0_i32_1 = arith.constant 0 : i32
    return %c0_i32, %c0_i32_0 : i32, i32
  }
  func.func @transform_5(%arg0: i32) -> (i32, i32) {
    %c0_i32 = arith.constant 0 : i32
    %c0_i32_0 = arith.constant 0 : i32
    %c0_i32_1 = arith.constant 0 : i32
    return %c0_i32, %c0_i32_0 : i32, i32
  }
  func.func @transform_6(%arg0: i32) -> (i32, i32) {
    %c0_i32 = arith.constant 0 : i32
    %c0_i32_0 = arith.constant 0 : i32
    %c0_i32_1 = arith.constant 0 : i32
    return %c0_i32, %c0_i32_0 : i32, i32
  }
  func.func @transform_7(%arg0: i32) -> (i32, i32) {
    %c0_i32 = arith.constant 0 : i32
    %c0_i32_0 = arith.constant 0 : i32
    return %arg0, %c0_i32 : i32, i32
  }
}

</mosaic_0001>

<bundles_post_ra>
// kernel: tpu_custom_call.1
= control target key start
LH: loop header
LB: loop body
LE: loop exit
PB: predicated region body
PF: predicated region fallthrough
CT: control target
= control target key end

     0   :  { %12 = vsyncpa [#allocation3], 0  ;;  %s551_s0 = inlined_call_operand.hbm [shape: bf16[16,32], index: 0, kind: input, shape index: {}]   ;;  %s552_s1 = inlined_call_operand.hbm [shape: bf16[32,128], index: 1, kind: input, shape index: {}]   ;;  %s553_s2 = inlined_call_operand.vmem [shape: f32[1,128], index: 2, kind: input, shape index: {}]   ;;  %s554_s3 = inlined_call_operand.vmem [shape: bf16[128,128], index: 3, kind: input, shape index: {}]   ;;  %s555_s4 = inlined_call_operand.vmem [shape: f32[1,128], index: 4, kind: input, shape index: {}]   ;;  %s556_s5 = inlined_call_operand.vmem [shape: bf16[128,8], index: 5, kind: input, shape index: {}]   ;;  %s557_s6 = inlined_call_operand.vmem [shape: f32[1,8], index: 6, kind: input, shape index: {}]   ;;  %s558_s7 = inlined_call_operand.vmem [shape: f32[16,8], index: 7, kind: output, shape index: {}]  }
   0x1   :  { %s18_s26 = sshll.u32 %s551_s0, 4  ;;  %s19_s26 = int_to_ptr.hbm [resolvable:$true] %s18_s26 }
   0x2   :  { %13 = vsyncpa [#allocation5], 0  ;;  %s438_s27 = smov [#allocation2]   ;;  %s31_s8 = sshll.u32 %s552_s1, 4  ;;  %s32_s8 = int_to_ptr.hbm [resolvable:$true] %s31_s8 }
   0x3   :  { %s20_s28 = sshll.u32 %s438_s27, 4  ;;  %s439_s9 = smov 64   ;;  %s21_s28 = int_to_ptr.vmem [resolvable:$true] %s20_s28 }
   0x4   :  { %s440_s10 = smov 4   ;;  %s441_s11 = smov [#allocation4]  }
   0x5   :  { %26 = dma.hbm_to_vmem [thread:$0]  %s19_s26, 128, %s21_s28, [#allocation3], %s439_s9, %s439_s9, %s440_s10  }
   0x6   :  { %s33_s12 = sshll.u32 %s441_s11, 4  ;;  %s34_s12 = int_to_ptr.vmem [resolvable:$true] %s33_s12 }
   0x7   :  { %39 = dma.hbm_to_vmem [thread:$0]  %s32_s8, 256, %s34_s12, [#allocation5], %s439_s9, %s439_s9, %s440_s10  }
   0x8   :  { %434 = dma.done.wait [#allocation3], 128  }
   0x9   :  { %435 = vsyncadd [#allocation3], 4294967168 }
   0xa   :  { %436 = dma.done.wait [#allocation5], 256  }
   0xb   :  { %437 = vsyncadd [#allocation5], 4294967040  ;;  %v362_v0 = vld [vmem:[#allocation4 + $0x8] sm:$0xff]  ;;  %v370_v1 = vld [vmem:[%s554_s3 + $0x38] sm:$0xff]  ;;  %vm86_vm0 = vcmask 261120   ;;  %vm274_vm1 = vcmask 64512  }
   0xc   :  { %96 = vmatpush.bf16.msra.mxu0 %v362_v0  ;;  %v361_v2 = vld [vmem:[#allocation4] sm:$0xff]  ;;  %175 = vmatpush.bf16.msra.mxu1 %v370_v1  ;;  %v369_v3 = vld [vmem:[%s554_s3 + $0x30] sm:$0xff]  ;;  %v360_v4 = vld [vmem:[#allocation2] sm:$0xff] }
   0xd   :  { %v368_v5 = vld [vmem:[%s554_s3 + $0x28] sm:$0xff]  ;;  %v367_v6 = vld [vmem:[%s554_s3 + $0x20] sm:$0xff]  ;;  %v366_v7 = vld [vmem:[%s554_s3 + $0x18] sm:$0xff] }
   0xe   :  { %v365_v8 = vld [vmem:[%s554_s3 + $0x10] sm:$0xff]  ;;  %v364_v9 = vld [vmem:[%s554_s3 + $0x8] sm:$0xff]  ;;  %v363_v10 = vld [vmem:[%s554_s3] sm:$0xff] }
   0xf   :  { %v378_v11 = vld [vmem:[%s556_s5 + $0x38] sm:$0xff]  ;;  %v377_v12 = vld [vmem:[%s556_s5 + $0x30] sm:$0xff]  ;;  %v376_v13 = vld [vmem:[%s556_s5 + $0x28] sm:$0xff] }
  0x10   :  { %97 = vmatpush.bf16.msra.mxu0 %v361_v2  ;;  %176 = vmatpush.bf16.msra.mxu1 %v369_v3  ;;  %v375_v14 = vld [vmem:[%s556_s5 + $0x20] sm:$0xff]  ;;  %v374_v23 = vld [vmem:[%s556_s5 + $0x18] sm:$0xff]  ;;  %v373_v24 = vld [vmem:[%s556_s5 + $0x10] sm:$0xff] }
  0x11   :  { %260 = vmatpush.bf16.msra.mxu2 %v378_v11  ;;  %v383_v16 = vld [vmem:[%s553_s2] ss:$0 sm:$0xff]  ;;  %v372_v25 = vld [vmem:[%s556_s5 + $0x8] sm:$0xff] }
  0x12   :  { %v371_v26 = vld [vmem:[%s556_s5] sm:$0xff] }
  0x13   :  { %295 = vmatmul.msk.bf16.vlgmr.msra.gmra.mxu0 %vm86_vm0, %v360_v4  ;;  %v384_v28 = vld [vmem:[%s555_s4] ss:$0 sm:$0xff] }
  0x14   :  { %177 = vmatpush.bf16.msra.mxu1 %v368_v5  ;;  %v385_v35 = vld [vmem:[%s557_s6] ss:$0 sm:$0xff] }
  0x15   :  { %261 = vmatpush.bf16.msra.mxu2 %v377_v12 }
  0x18   :  { %178 = vmatpush.bf16.msra.mxu1 %v367_v6 }
  0x19   :  { %262 = vmatpush.bf16.msra.mxu2 %v376_v13 }
  0x1c   :  { %179 = vmatpush.bf16.msra.mxu1 %v366_v7 }
  0x1d   :  { %263 = vmatpush.bf16.msra.mxu2 %v375_v14 }
  0x20   :  { %180 = vmatpush.bf16.msra.mxu1 %v365_v8 }
  0x21   :  { %264 = vmatpush.bf16.msra.mxu2 %v374_v23 }
  0x24   :  { %181 = vmatpush.bf16.msra.mxu1 %v364_v9 }
  0x25   :  { %265 = vmatpush.bf16.msra.mxu2 %v373_v24 }
  0x28   :  { %182 = vmatpush.bf16.msra.mxu1 %v363_v10 }
  0x29   :  { %266 = vmatpush.bf16.msra.mxu2 %v372_v25 }
  0x2d   :  { %267 = vmatpush.bf16.msra.mxu2 %v371_v26 }
  0x90   :  { %v99_v15 = vpop.f32.mrf.mxu0 }
  0x91   :  { %v100_v17 = vadd.f32 %v383_v16, %v99_v15 }
  0x93   :  { %v104_v20 = vmax.f32 %v100_v17, 0.0 }
  0x98   :  { %v101_v18 = vpop.f32.mrf.mxu0 }
  0x99   :  { %v102_v19 = vadd.f32 %v383_v16, %v101_v18 }
  0x9b   :  { %v105_v21 = vmax.f32 %v102_v19, 0.0 }
  0x9d   :  { %v106_v22 = vpack.c.bf16 %v105_v21, %v104_v20 }
  0x9f   :  { %183 = vmatmul.bf16.vlgmr.msra.gmra.mxu1 %v106_v22 }
 0x11c   :  { %v184_v27 = vpop.f32.mrf.mxu1 }
 0x11d   :  { %v185_v29 = vadd.f32 %v384_v28, %v184_v27 }
 0x11f   :  { %v189_v32 = vmax.f32 %v185_v29, 0.0 }
 0x124   :  { %v186_v30 = vpop.f32.mrf.mxu1 }
 0x125   :  { %v187_v31 = vadd.f32 %v384_v28, %v186_v30 }
 0x127   :  { %v190_v33 = vmax.f32 %v187_v31, 0.0 }
 0x129   :  { %v191_v34 = vpack.c.bf16 %v190_v33, %v189_v32 }
 0x12b   :  { %268 = vmatmul.bf16.vlgmr.msra.gmra.mxu2 %v191_v34 }
 0x1ae   :  { %v269_v36 = vpop.f32.mrf.mxu2 }
 0x1af   :  { %v270_v37 = vadd.f32 %v385_v35, %v269_v36 }
 0x1b1   :  { %275 = vst.msk [vmem:[%s558_s7] sm:$0xff] %vm274_vm1, %v270_v37 }
 0x1b6   :  { %v271_v38 = vpop.f32.mrf.mxu2 }
 0x1b7   :  { %v272_v39 = vadd.f32 %v385_v35, %v271_v38 }
 0x1b9   :  { %276 = vst.msk [vmem:[%s558_s7 + $0x8] sm:$0xff] %vm274_vm1, %v272_v39 }
 0x1ba   :  { %281 = vsyncpa [#allocation3], 1 }
 0x1bb   :  { %282 = vsyncpa [#allocation5], 1 }

</bundles_post_ra>
